<compile_context>
chip_gen: v7x
topology: tpu7x:2x2x1
jax: 0.10.0
libtpu: 0.0.40
codegen_flags: <defaults>
</compile_context>

<pallas_src>
import functools

import jax
import jax.numpy as jnp
from jax import lax
from jax.experimental import pallas as pl
from jax.experimental.pallas import tpu as pltpu


_CHUNK = 512  # lanes per in-kernel reduction/apply chunk (multiple of 128)


# ----------------------------------------------------------------------------
# VMEM budget helpers
# ----------------------------------------------------------------------------
def _vmem_capacity_bytes():
    cap = None
    try:
        info = pltpu.get_tpu_info()
        cap = getattr(info, "vmem_capacity_bytes", None)
    except Exception:
        cap = None
    if not cap:
        cap = 64 * 1024 * 1024  # conservative default (v7x-sized)
    return int(cap)


def _chunking(hw):
    """(chunk, n_full, rem): lane-aligned chunking of a length-hw axis."""
    chunk = min(_CHUNK, (hw // 128) * 128)
    if chunk <= 0:
        return 0, 0, hw
    n_full = hw // chunk
    return chunk, n_full, hw - n_full * chunk


def _choose_out_tile(hw):
    """Largest multiple-of-128 divisor of hw (<=2048) giving >=4 (else >=2)
    grid steps; hw itself (K=1, in-kernel chunked apply) otherwise."""
    cands = [d for d in range(128, min(hw, 2048) + 1, 128) if hw % d == 0]
    if not cands:
        return hw
    for min_steps in (4, 2):
        good = [d for d in cands if hw // d >= min_steps]
        if good:
            return max(good)
    return hw


def _single_pass_bytes(C, hw, thw, isz):
    resident_in = 2 * C * hw * isz            # double-buffered input slab
    out_tiles = 2 * C * thw * isz             # double-buffered output tiles
    temps = 4 * C * max(_CHUNK, thw) * 4      # f32 chunk / tile temporaries
    return resident_in + out_tiles + temps + (1 << 16)


def _choose_c_tile(C, hw, isz, budget):
    """Channel tile for the two-pass fallback: multiple of 8 dividing C (or C
    itself) whose double-buffered in+out blocks + temps fit the budget."""
    cands = [d for d in range(8, C + 1, 8) if C % d == 0]
    if not cands:
        return C

    def cost(ct):
        return 4 * ct * hw * isz + 4 * ct * _CHUNK * 4 + (1 << 16)

    fitting = [d for d in cands if cost(d) <= budget]
    return max(fitting) if fitting else min(cands)
    # TODO(synk): extreme spatial sizes where even ctile=8 overflows VMEM
    # would additionally need HW tiling in the fallback.


# ----------------------------------------------------------------------------
# In-kernel helpers (chunked, exact two-sweep statistics)
# ----------------------------------------------------------------------------
def _chunked_channel_sums(x_ref, hw, fn, init):
    """Accumulate fn(chunk_f32) over lane-chunks of x_ref (C, hw) -> (C, 1)."""
    chunk, n_full, rem = _chunking(hw)
    acc = init
    if n_full > 0:
        def body(i, a):
            off = pl.multiple_of(i * chunk, 128)
            xc = x_ref[:, pl.ds(off, chunk)].astype(jnp.float32)
            return a + fn(xc)
        acc = lax.fori_loop(0, n_full, body, acc)
    if rem > 0:
        xc = x_ref[:, n_full * chunk:hw].astype(jnp.float32)
        acc = acc + fn(xc)
    return acc


def _channel_stats(x_ref, hw, C):
    """Exact two-sweep per-channel (mean, sum of squared deviations)."""
    s = _chunked_channel_sums(
        x_ref, hw, lambda xc: jnp.sum(xc, axis=1, keepdims=True),
        jnp.zeros((C, 1), jnp.float32))
    mean = s * (1.0 / hw)
    ss = _chunked_channel_sums(
        x_ref, hw,
        lambda xc: jnp.sum((xc - mean) * (xc - mean), axis=1, keepdims=True),
        jnp.zeros((C, 1), jnp.float32))
    return mean, ss


def _fold_scale_shift(in_mean, in_ss, a, b, beta, hw, C, eps):
    """Fold instance + layer norm + (rho, gamma, beta) into one per-channel
    affine (scale, shift).  LN stats derived exactly from channel stats."""
    in_var = in_ss / (hw - 1)                                   # unbiased
    ln_mean = jnp.mean(in_mean, axis=0, keepdims=True)          # (1, 1)
    dm = in_mean - ln_mean
    ln_ss = jnp.sum(in_ss + hw * dm * dm, axis=0, keepdims=True)
    ln_var = ln_ss / (C * hw - 1)                               # unbiased
    inv_in = lax.rsqrt(in_var + eps)
    inv_ln = lax.rsqrt(ln_var + eps)
    scale = a * inv_in + b * inv_ln
    shift = beta - (a * in_mean * inv_in + b * ln_mean * inv_ln)
    return scale, shift


def _chunked_apply(x_ref, o_ref, scale, shift, hw):
    """o[:, :hw] = x[:, :hw]*scale + shift, chunk-by-chunk (aligned stores
    except the final <128-lane tail)."""
    chunk, n_full, rem = _chunking(hw)
    if n_full > 0:
        @pl.loop(0, n_full)
        def _(i):
            off = pl.multiple_of(i * chunk, 128)
            xc = x_ref[:, pl.ds(off, chunk)].astype(jnp.float32)
            o_ref[:, pl.ds(off, chunk)] = (xc * scale + shift).astype(o_ref.dtype)
    if rem > 0:
        xc = x_ref[:, n_full * chunk:hw].astype(jnp.float32)
        o_ref[:, n_full * chunk:hw] = (xc * scale + shift).astype(o_ref.dtype)


# ----------------------------------------------------------------------------
# Single-pass kernel: input slab resident per batch, output tiled over HW
# ----------------------------------------------------------------------------
def _iln_single_pass_kernel(x_ref, p_ref, o_ref, scale_ref, shift_ref,
                            *, eps, hw, thw, chunked_apply):
    # x_ref: (C, hw) resident; p_ref: (C, 3) [a=gamma*rho, b=gamma*(1-rho), beta]
    # o_ref: (C, thw) tile (thw == hw when chunked_apply)
    k = pl.program_id(1)
    C = x_ref.shape[0]

    @pl.when(k == 0)
    def _():
        in_mean, in_ss = _channel_stats(x_ref, hw, C)
        a = p_ref[:, 0:1]
        b = p_ref[:, 1:2]
        beta = p_ref[:, 2:3]
        scale, shift = _fold_scale_shift(in_mean, in_ss, a, b, beta, hw, C, eps)
        scale_ref[...] = scale
        shift_ref[...] = shift

    scale = scale_ref[...]
    shift = shift_ref[...]

    if chunked_apply:
        # K == 1: whole-slab output, written in lane-aligned chunks.
        _chunked_apply(x_ref, o_ref, scale, shift, hw)
    else:
        off = pl.multiple_of(k * thw, 128)
        xc = x_ref[:, pl.ds(off, thw)].astype(jnp.float32)
        o_ref[...] = (xc * scale + shift).astype(o_ref.dtype)


# ----------------------------------------------------------------------------
# Two-pass fallback kernels (tiled over channels, both grid axes parallel)
# ----------------------------------------------------------------------------
def _iln_stats_kernel(x_ref, st_ref, *, hw):
    # x_ref: (ctile, hw); st_ref: (ctile, 2) = [mean, sum of squared devs]
    Ct = x_ref.shape[0]
    mean, ss = _channel_stats(x_ref, hw, Ct)
    st_ref[:, 0:1] = mean
    st_ref[:, 1:2] = ss


def _iln_apply_kernel(x_ref, p_ref, o_ref, *, hw):
    # x_ref: (ctile, hw); p_ref: (ctile, 2) = [scale, shift]
    scale = p_ref[:, 0:1]
    shift = p_ref[:, 1:2]
    _chunked_apply(x_ref, o_ref, scale, shift, hw)


# ----------------------------------------------------------------------------
# Public forward
# ----------------------------------------------------------------------------
def iln_forward(x, rho, gamma, beta, eps=1e-5, *, force_two_pass=False,
                vmem_budget_bytes=None):
    """ILN forward.  x: (N, C, H, W); rho/gamma/beta: (1, C, 1, 1)."""
    N, C, H, W = x.shape
    HW = H * W
    if HW <= 1 or C * HW <= 1:
        raise ValueError("ILN requires H*W > 1 (unbiased variance).")

    x_flat = x.reshape(N, C, HW)
    isz = x.dtype.itemsize

    cap = _vmem_capacity_bytes()
    vmem_limit = cap
    budget = (cap * 85) // 100 if vmem_budget_bytes is None else int(vmem_budget_bytes)

    thw = _choose_out_tile(HW)
    K = HW // thw

    use_single = (not force_two_pass) and (_single_pass_bytes(C, HW, thw, isz) <= budget)

    if use_single:
        # ----------------- single-pass path (2 HBM sweeps) -----------------
        params = jnp.stack(
            [
                (gamma * rho).reshape(C),
                (gamma * (1.0 - rho)).reshape(C),
                beta.reshape(C),
            ],
            axis=-1,
        ).astype(jnp.float32)                                    # (C, 3)

        kernel = functools.partial(
            _iln_single_pass_kernel, eps=float(eps), hw=HW, thw=thw,
            chunked_apply=(K == 1))

        out_flat = pl.pallas_call(
            kernel,
            out_shape=jax.ShapeDtypeStruct((N, C, HW), x.dtype),
            grid_spec=pltpu.PrefetchScalarGridSpec(
                num_scalar_prefetch=0,
                grid=(N, K),
                in_specs=[
                    pl.BlockSpec((None, C, HW), lambda b, k: (b, 0, 0)),  # resident
                    pl.BlockSpec((C, 3), lambda b, k: (0, 0)),            # params
                ],
                out_specs=pl.BlockSpec((None, C, thw), lambda b, k: (b, 0, k)),
                scratch_shapes=[pltpu.VMEM((C, 1), jnp.float32),
                                pltpu.VMEM((C, 1), jnp.float32)],
            ),
            compiler_params=pltpu.CompilerParams(
                dimension_semantics=("parallel", "arbitrary"),
                vmem_limit_bytes=vmem_limit,
            ),
        )(x_flat, params)
        return out_flat.reshape(N, C, H, W)

    # ----------------- two-pass fallback (channel-tiled) -----------------
    ctile = _choose_c_tile(C, HW, isz, budget)
    G = C // ctile

    stats = pl.pallas_call(
        functools.partial(_iln_stats_kernel, hw=HW),
        out_shape=jax.ShapeDtypeStruct((N, C, 2), jnp.float32),
        grid_spec=pltpu.PrefetchScalarGridSpec(
            num_scalar_prefetch=0,
            grid=(N, G),
            in_specs=[pl.BlockSpec((None, ctile, HW), lambda b, c: (b, c, 0))],
            out_specs=pl.BlockSpec((None, ctile, 2), lambda b, c: (b, c, 0)),
        ),
        compiler_params=pltpu.CompilerParams(
            dimension_semantics=("parallel", "parallel"),
            vmem_limit_bytes=vmem_limit,
        ),
    )(x_flat)

    # Tiny per-(N, C) math in plain JAX: exact LN combination + fused affine.
    in_mean = stats[:, :, 0]                                     # (N, C)
    in_ss = stats[:, :, 1]                                       # (N, C)
    in_var = in_ss / (HW - 1)
    ln_mean = jnp.mean(in_mean, axis=1, keepdims=True)           # (N, 1)
    dm = in_mean - ln_mean
    ln_ss = jnp.sum(in_ss + HW * dm * dm, axis=1, keepdims=True)
    ln_var = ln_ss / (C * HW - 1)

    inv_in = lax.rsqrt(in_var + eps)                             # (N, C)
    inv_ln = lax.rsqrt(ln_var + eps)                             # (N, 1)

    a = (gamma * rho).reshape(1, C).astype(jnp.float32)
    b = (gamma * (1.0 - rho)).reshape(1, C).astype(jnp.float32)
    bt = beta.reshape(1, C).astype(jnp.float32)

    scale = a * inv_in + b * inv_ln                              # (N, C)
    shift = bt - (a * in_mean * inv_in + b * ln_mean * inv_ln)   # (N, C)
    ps = jnp.stack([scale, shift], axis=-1).astype(jnp.float32)  # (N, C, 2)

    out_flat = pl.pallas_call(
        functools.partial(_iln_apply_kernel, hw=HW),
        out_shape=jax.ShapeDtypeStruct((N, C, HW), x.dtype),
        grid_spec=pltpu.PrefetchScalarGridSpec(
            num_scalar_prefetch=0,
            grid=(N, G),
            in_specs=[
                pl.BlockSpec((None, ctile, HW), lambda b, c: (b, c, 0)),  # x
                pl.BlockSpec((None, ctile, 2), lambda b, c: (b, c, 0)),   # scale/shift
            ],
            out_specs=pl.BlockSpec((None, ctile, HW), lambda b, c: (b, c, 0)),
        ),
        compiler_params=pltpu.CompilerParams(
            dimension_semantics=("parallel", "parallel"),
            vmem_limit_bytes=vmem_limit,
        ),
    )(x_flat, ps)
    return out_flat.reshape(N, C, H, W)


# ----------------------------------------------------------------------------
# Pure-JAX reference (matches the PyTorch forward, unbiased variance)
# ----------------------------------------------------------------------------
def iln_reference(x, rho, gamma, beta, eps=1e-5):
    x = x.astype(jnp.float32)
    N, C, H, W = x.shape
    in_mean = jnp.mean(x, axis=(2, 3), keepdims=True)
    in_var = jnp.sum((x - in_mean) ** 2, axis=(2, 3), keepdims=True) / (H * W - 1)
    out_in = (x - in_mean) / jnp.sqrt(in_var + eps)
    ln_mean = jnp.mean(x, axis=(1, 2, 3), keepdims=True)
    ln_var = jnp.sum((x - ln_mean) ** 2, axis=(1, 2, 3), keepdims=True) / (C * H * W - 1)
    out_ln = (x - ln_mean) / jnp.sqrt(ln_var + eps)
    out = rho * out_in + (1.0 - rho) * out_ln
    return out * gamma + beta


if __name__ == "__main__":
    key = jax.random.PRNGKey(0)
    k1, k2, k3, k4 = jax.random.split(key, 4)

    N, C, H, W = 2, 4, 16, 16
    x = jax.random.normal(k1, (N, C, H, W), dtype=jnp.float32)

    # Parameter init exactly as in the PyTorch __init__: rho=0, gamma=1, beta=0
    rho0 = jnp.zeros((1, C, 1, 1), jnp.float32)
    gamma0 = jnp.ones((1, C, 1, 1), jnp.float32)
    beta0 = jnp.zeros((1, C, 1, 1), jnp.float32)

    out = jax.block_until_ready(iln_forward(x, rho0, gamma0, beta0))
    ref = iln_reference(x, rho0, gamma0, beta0)
    assert out.shape == (N, C, H, W)
    assert jnp.allclose(out, ref, atol=1e-4, rtol=1e-4), "mismatch (init params)"

    # Non-trivial params exercise the full fused affine combination.
    rho = jax.random.uniform(k2, (1, C, 1, 1), dtype=jnp.float32)
    gamma = jax.random.normal(k3, (1, C, 1, 1), dtype=jnp.float32)
    beta = jax.random.normal(k4, (1, C, 1, 1), dtype=jnp.float32)

    out2 = jax.block_until_ready(iln_forward(x, rho, gamma, beta))
    ref2 = iln_reference(x, rho, gamma, beta)
    assert jnp.allclose(out2, ref2, atol=1e-4, rtol=1e-4), "mismatch (random params)"

    # Non-multiple-of-128 spatial size: K == 1 path, chunked apply + ragged tail.
    x3 = jax.random.normal(k1, (N, C, 12, 12), dtype=jnp.float32)
    out3 = jax.block_until_ready(iln_forward(x3, rho, gamma, beta))
    ref3 = iln_reference(x3, rho, gamma, beta)
    assert jnp.allclose(out3, ref3, atol=1e-4, rtol=1e-4), "mismatch (ragged HW)"

    # Explicit two-pass (channel-tiled) fallback path.
    out4 = jax.block_until_ready(iln_forward(x, rho, gamma, beta, force_two_pass=True))
    assert jnp.allclose(out4, ref2, atol=1e-4, rtol=1e-4), "mismatch (two-pass path)"

    # bf16 I/O (stats computed in f32 inside the kernel).
    xb = x.astype(jnp.bfloat16)
    out5 = jax.block_until_ready(iln_forward(xb, rho, gamma, beta))
    ref5 = iln_reference(xb, rho, gamma, beta)
    assert jnp.allclose(out5.astype(jnp.float32), ref5, atol=5e-2, rtol=5e-2), "mismatch (bf16)"

    print("KERNEL_OK")
</pallas_src>

<mosaic_0001>
module attributes {stable_mosaic.version = 11 : i64} {
  func.func @_iln_single_pass_kernel(%arg0: i32, %arg1: i32, %arg2: memref<1x4x256xf32, #tpu.memory_space<vmem>>, %arg3: memref<4x3xf32, #tpu.memory_space<vmem>>, %arg4: memref<1x4x128xf32, #tpu.memory_space<vmem>>, %arg5: memref<4x1xf32, #tpu.memory_space<vmem>>, %arg6: memref<4x1xf32, #tpu.memory_space<vmem>>) attributes {dimension_semantics = [#tpu.dimension_semantics<parallel>, #tpu.dimension_semantics<arbitrary>], iteration_bounds = array<i64: 2, 2>, scalar_prefetch = 0 : i64, scratch_operands = 2 : i64, tpu.core_type = #tpu.core_type<tc>, window_params = [{transform_indices = @transform_0, window_bounds = array<i64: 1, 4, 256>}, {pipeline_mode = #tpu.pipeline_mode<synchronous>, transform_indices = @transform_1, window_bounds = array<i64: 4, 3>}, {transform_indices = @transform_2, window_bounds = array<i64: 1, 4, 128>}]} {
    %c0_i32 = arith.constant 0 : i32
    %0 = arith.cmpi eq, %arg1, %c0_i32 : i32
    %1 = arith.extui %0 : i1 to i32
    %c0_i32_0 = arith.constant 0 : i32
    %2 = arith.cmpi ne, %1, %c0_i32_0 : i32
    scf.if %2 {
      %cst = arith.constant 0.000000e+00 : f32
      %17 = vector.broadcast %cst : f32 to vector<4x1xf32>
      %c0_i32_9 = arith.constant 0 : i32
      %c256_i32 = arith.constant 256 : i32
      %18 = arith.muli %c0_i32_9, %c256_i32 : i32
      %19 = tpu.assume_multiple %18, 128 : i32
      %c0_10 = arith.constant 0 : index
      %c0_11 = arith.constant 0 : index
      %20 = arith.index_cast %19 : i32 to index
      %21 = vector.load %arg2[%c0_10, %c0_11, %20] : memref<1x4x256xf32, #tpu.memory_space<vmem>>, vector<1x4x256xf32>
      %22 = vector.shape_cast %21 : vector<1x4x256xf32> to vector<4x256xf32>
      %cst_12 = arith.constant dense<0.000000e+00> : vector<4xf32>
      %23 = vector.multi_reduction <add>, %22, %cst_12 [1] : vector<4x256xf32> to vector<4xf32>
      %24 = vector.shape_cast %23 : vector<4xf32> to vector<4x1xf32>
      %25 = arith.addf %17, %24 : vector<4x1xf32>
      %c1_i32 = arith.constant 1 : i32
      %cst_13 = arith.constant 3.906250e-03 : f32
      %26 = vector.broadcast %cst_13 : f32 to vector<4x1xf32>
      %27 = arith.mulf %25, %26 : vector<4x1xf32>
      %cst_14 = arith.constant 0.000000e+00 : f32
      %28 = vector.broadcast %cst_14 : f32 to vector<4x1xf32>
      %c0_i32_15 = arith.constant 0 : i32
      %c256_i32_16 = arith.constant 256 : i32
      %29 = arith.muli %c0_i32_15, %c256_i32_16 : i32
      %30 = tpu.assume_multiple %29, 128 : i32
      %c0_17 = arith.constant 0 : index
      %c0_18 = arith.constant 0 : index
      %31 = arith.index_cast %30 : i32 to index
      %32 = vector.load %arg2[%c0_17, %c0_18, %31] : memref<1x4x256xf32, #tpu.memory_space<vmem>>, vector<1x4x256xf32>
      %33 = vector.shape_cast %32 : vector<1x4x256xf32> to vector<4x256xf32>
      %34 = vector.broadcast %27 : vector<4x1xf32> to vector<4x256xf32>
      %35 = arith.subf %33, %34 : vector<4x256xf32>
      %36 = vector.broadcast %27 : vector<4x1xf32> to vector<4x256xf32>
      %37 = arith.subf %33, %36 : vector<4x256xf32>
      %38 = arith.mulf %35, %37 : vector<4x256xf32>
      %cst_19 = arith.constant dense<0.000000e+00> : vector<4xf32>
      %39 = vector.multi_reduction <add>, %38, %cst_19 [1] : vector<4x256xf32> to vector<4xf32>
      %40 = vector.shape_cast %39 : vector<4xf32> to vector<4x1xf32>
      %41 = arith.addf %28, %40 : vector<4x1xf32>
      %c1_i32_20 = arith.constant 1 : i32
      %c0_21 = arith.constant 0 : index
      %c0_22 = arith.constant 0 : index
      %42 = vector.load %arg3[%c0_21, %c0_22] : memref<4x3xf32, #tpu.memory_space<vmem>>, vector<4x1xf32>
      %c0_23 = arith.constant 0 : index
      %c1 = arith.constant 1 : index
      %43 = vector.load %arg3[%c0_23, %c1] : memref<4x3xf32, #tpu.memory_space<vmem>>, vector<4x1xf32>
      %c0_24 = arith.constant 0 : index
      %c2 = arith.constant 2 : index
      %44 = vector.load %arg3[%c0_24, %c2] : memref<4x3xf32, #tpu.memory_space<vmem>>, vector<4x1xf32>
      %cst_25 = arith.constant 2.550000e+02 : f32
      %45 = vector.broadcast %cst_25 : f32 to vector<4x1xf32>
      %46 = arith.divf %41, %45 : vector<4x1xf32>
      %cst_26 = arith.constant dense<0.000000e+00> : vector<1xf32>
      %47 = vector.multi_reduction <add>, %27, %cst_26 [0] : vector<4x1xf32> to vector<1xf32>
      %48 = vector.shape_cast %47 : vector<1xf32> to vector<1x1xf32>
      %cst_27 = arith.constant 4.000000e+00 : f32
      %49 = vector.broadcast %cst_27 : f32 to vector<1x1xf32>
      %50 = arith.divf %48, %49 : vector<1x1xf32>
      %51 = vector.broadcast %50 : vector<1x1xf32> to vector<4x1xf32>
      %52 = arith.subf %27, %51 : vector<4x1xf32>
      %cst_28 = arith.constant 2.560000e+02 : f32
      %53 = vector.broadcast %cst_28 : f32 to vector<4x1xf32>
      %54 = arith.mulf %53, %52 : vector<4x1xf32>
      %55 = arith.mulf %54, %52 : vector<4x1xf32>
      %56 = arith.addf %41, %55 : vector<4x1xf32>
      %cst_29 = arith.constant dense<0.000000e+00> : vector<1xf32>
      %57 = vector.multi_reduction <add>, %56, %cst_29 [0] : vector<4x1xf32> to vector<1xf32>
      %58 = vector.shape_cast %57 : vector<1xf32> to vector<1x1xf32>
      %cst_30 = arith.constant 1.023000e+03 : f32
      %59 = vector.broadcast %cst_30 : f32 to vector<1x1xf32>
      %60 = arith.divf %58, %59 : vector<1x1xf32>
      %cst_31 = arith.constant 9.99999974E-6 : f32
      %61 = vector.broadcast %cst_31 : f32 to vector<4x1xf32>
      %62 = arith.addf %46, %61 : vector<4x1xf32>
      %63 = math.rsqrt %62 : vector<4x1xf32>
      %cst_32 = arith.constant 9.99999974E-6 : f32
      %64 = vector.broadcast %cst_32 : f32 to vector<1x1xf32>
      %65 = arith.addf %60, %64 : vector<1x1xf32>
      %66 = math.rsqrt %65 : vector<1x1xf32>
      %67 = arith.mulf %42, %63 : vector<4x1xf32>
      %68 = vector.broadcast %66 : vector<1x1xf32> to vector<4x1xf32>
      %69 = arith.mulf %43, %68 : vector<4x1xf32>
      %70 = arith.addf %67, %69 : vector<4x1xf32>
      %71 = arith.mulf %42, %27 : vector<4x1xf32>
      %72 = arith.mulf %71, %63 : vector<4x1xf32>
      %73 = vector.broadcast %50 : vector<1x1xf32> to vector<4x1xf32>
      %74 = arith.mulf %43, %73 : vector<4x1xf32>
      %75 = vector.broadcast %66 : vector<1x1xf32> to vector<4x1xf32>
      %76 = arith.mulf %74, %75 : vector<4x1xf32>
      %77 = arith.addf %72, %76 : vector<4x1xf32>
      %78 = arith.subf %44, %77 : vector<4x1xf32>
      %c0_33 = arith.constant 0 : index
      %c0_34 = arith.constant 0 : index
      %79 = vector.load %arg5[%c0_33, %c0_34] : memref<4x1xf32, #tpu.memory_space<vmem>>, vector<4x1xf32>
      tpu.vector_store %arg5[%c0_33, %c0_34], %70 {strides = array<i32>} : memref<4x1xf32, #tpu.memory_space<vmem>>, vector<4x1xf32>,
      %c0_35 = arith.constant 0 : index
      %c0_36 = arith.constant 0 : index
      %80 = vector.load %arg6[%c0_35, %c0_36] : memref<4x1xf32, #tpu.memory_space<vmem>>, vector<4x1xf32>
      tpu.vector_store %arg6[%c0_35, %c0_36], %78 {strides = array<i32>} : memref<4x1xf32, #tpu.memory_space<vmem>>, vector<4x1xf32>,
    } else {
    }
    %c0 = arith.constant 0 : index
    %c0_1 = arith.constant 0 : index
    %3 = vector.load %arg5[%c0, %c0_1] : memref<4x1xf32, #tpu.memory_space<vmem>>, vector<4x1xf32>
    %c0_2 = arith.constant 0 : index
    %c0_3 = arith.constant 0 : index
    %4 = vector.load %arg6[%c0_2, %c0_3] : memref<4x1xf32, #tpu.memory_space<vmem>>, vector<4x1xf32>
    %c128_i32 = arith.constant 128 : i32
    %5 = arith.muli %arg1, %c128_i32 : i32
    %6 = tpu.assume_multiple %5, 128 : i32
    %c0_4 = arith.constant 0 : index
    %c0_5 = arith.constant 0 : index
    %7 = arith.index_cast %6 : i32 to index
    %8 = vector.load %arg2[%c0_4, %c0_5, %7] : memref<1x4x256xf32, #tpu.memory_space<vmem>>, vector<1x4x128xf32>
    %9 = vector.shape_cast %8 : vector<1x4x128xf32> to vector<4x128xf32>
    %10 = vector.broadcast %3 : vector<4x1xf32> to vector<4x128xf32>
    %11 = arith.mulf %9, %10 : vector<4x128xf32>
    %12 = vector.broadcast %4 : vector<4x1xf32> to vector<4x128xf32>
    %13 = arith.addf %11, %12 : vector<4x128xf32>
    %c0_6 = arith.constant 0 : index
    %c0_7 = arith.constant 0 : index
    %c0_8 = arith.constant 0 : index
    %14 = vector.load %arg4[%c0_6, %c0_7, %c0_8] : memref<1x4x128xf32, #tpu.memory_space<vmem>>, vector<1x4x128xf32>
    %15 = vector.shape_cast %14 : vector<1x4x128xf32> to vector<4x128xf32>
    %16 = vector.shape_cast %13 : vector<4x128xf32> to vector<1x4x128xf32>
    tpu.vector_store %arg4[%c0_6, %c0_7, %c0_8], %16 {strides = array<i32>} : memref<1x4x128xf32, #tpu.memory_space<vmem>>, vector<1x4x128xf32>,
    return
  }
  func.func @transform_0(%arg0: i32, %arg1: i32) -> (i32, i32, i32) {
    %c0_i32 = arith.constant 0 : i32
    %c0_i32_0 = arith.constant 0 : i32
    %c0_i32_1 = arith.constant 0 : i32
    return %arg0, %c0_i32, %c0_i32_0 : i32, i32, i32
  }
  func.func @transform_1(%arg0: i32, %arg1: i32) -> (i32, i32) {
    %c0_i32 = arith.constant 0 : i32
    %c0_i32_0 = arith.constant 0 : i32
    %c0_i32_1 = arith.constant 0 : i32
    return %c0_i32, %c0_i32_0 : i32, i32
  }
  func.func @transform_2(%arg0: i32, %arg1: i32) -> (i32, i32, i32) {
    %c0_i32 = arith.constant 0 : i32
    %c0_i32_0 = arith.constant 0 : i32
    return %arg0, %c0_i32, %arg1 : i32, i32, i32
  }
}

</mosaic_0001>

<bundles_post_ra>
// kernel: tpu_custom_call.1
= control target key start
LH: loop header
LB: loop body
LE: loop exit
PB: predicated region body
PF: predicated region fallthrough
CT: control target
= control target key end

     0   :  { %s1050_s0 = inlined_call_operand.hbm [shape: f32[2,4,256], index: 0, kind: input, shape index: {}]   ;;  %s1051_s1 = inlined_call_operand.hbm [shape: f32[4,3], index: 1, kind: input, shape index: {}]   ;;  %s1052_s2 = inlined_call_operand.hbm [shape: f32[2,4,256], index: 2, kind: output, shape index: {}]  }
   0x1   :  { %1062 = sst [smem:[#allocation17_spill]] %s1051_s1 }
   0x2   :  { %7 = vsyncpa [#allocation5], 0 }
   0x3   :  { %9 = vsyncpa [#allocation5 + $0x1], 0 }
   0x4   :  { %10 = vsyncpa [#allocation8], 0 }
   0x5   :  { %11 = vsyncpa [#allocation6], 0 }
   0x6   :  { %13 = vsyncpa [#allocation6 + $0x1], 0  ;;  %s766_s9 = smov 0   ;;  %s768_s10 = smov 0  }
   0x7   :  { %s770_s11 = smov 0   ;;  %s772_s12 = smov 0  }
   0x8   :  { %s774_s13 = smov 0   ;;  %s776_s14 = smov 0  }
   0x9   :  { %s778_s15 = smov 0   ;;  %s780_s16 = smov 0  }
   0xa   :  { %s782_s17 = smov 0   ;;  %s784_s18 = smov 0  }
   0xb   :  { %s786_s19 = smov 0  }
   0xc LB: > { %1063 = sst [smem:[#allocation13_spill]] %s733_s17  ;;  %s412_s20 = sadd.s32 4294967295, %s741_s19   ;;  %s741_s19 = sphi %s786_s19, %s19_s19   ;;  %s737_s18 = sphi %s784_s18, %s1092_s18   ;;  %s733_s17 = sphi %s782_s17, %s1083_s17   ;;  %s729_s16 = sphi %s780_s16, %s1091_s16   ;;  %s725_s15 = sphi %s778_s15, %s1082_s15   ;;  %s721_s14 = sphi %s776_s14, %s1090_s14   ;;  %s717_s13 = sphi %s774_s13, %s1089_s13   ;;  %s713_s12 = sphi %s772_s12, %s1088_s12   ;;  %s709_s11 = sphi %s770_s11, %s1087_s11   ;;  %s705_s10 = sphi %s768_s10, %s1086_s10   ;;  %s701_s9 = sphi %s766_s9, %s1085_s9  }
   0xd   : > { %s413_s21 = sadd.s32 4294967294, %s741_s19   ;;  %p51_p0 = scmp.ne.s32.totalorder %s717_s13, %s713_s12 }
   0xe   : > { %p822_p1 = scmp.eq.s32.totalorder %s412_s20, 0  ;;  %s87_s23 = sadd.s32 1, %s709_s11 }
   0xf   : > { %p97_p2 = scmp.ne.s32.totalorder %s709_s11, %s705_s10  ;;  %p98_p4 = scmp.eq.s32.totalorder %s412_s20, 3 }
  0x10   : > { %s1064_s22 = scalar_select %p822_p1, 1, 0 }
  0x11   : > { %p831_p3 = por %p822_p1, %p51_p0  ;;  %p103_p5 = scmp.ne.s32.totalorder %s705_s10, %s701_s9 }
  0x12   : > { %p104_p6 = scmp.eq.s32.totalorder %s413_s21, 3  ;;  %p837_p7 = por %p98_p4, %p97_p2 }
  0x13   : > { %s1065_s24 = scalar_select %p831_p3, 1, 0 }
  0x14   : > { %s1066_s25 = scalar_select %p837_p7, 1, 0 }
  0x15   : > { %p414_p8 = scmp.ge.s32.totalorder %s741_s19, 1  ;;  %p842_p9 = por %p104_p6, %p103_p5 }
  0x16   : > { %p111_p10 = scmp.lt.s32.totalorder %s741_s19, 5  ;;  %s743_s28 = smov [#allocation7]  }
  0x17   : > { %s1067_s26 = scalar_select %p842_p9, 1, 0 }
  0x18   : > { %p847_p11 = pnand %p414_p8, %p111_p10  ;;  %s124_s29 = sshll.u32 %s743_s28, 4  ;;  %s125_s29 = int_to_ptr.vmem [resolvable:$true] %s124_s29 }
  0x19   : > { %1068 = sst [smem:[#allocation14_spill]] %s1067_s26  ;;  %s28_s3 = sadd.s32 1, %s733_s17 }
  0x1a   : > { %s1069_s27 = scalar_select %p847_p11, 1, 0 }
  0x1b   : > { %p441_p12 = pneg %p847_p11  ;;  %s1071_s1 = sld [smem:[#allocation17_spill]] }
  0x1d   : > { %p855_p13 = pnand %p441_p12, %p822_p1 }
  0x1f   : > { %p559_p2 = pneg %p855_p13 }
  0x21   : > { %s557_s6 = scalar_lea.hbm %s1071_s1, 64 }
  0x22   : > { %p558_p0 = scmp.ne.s32.totalorder %s1071_s1, %s557_s6  ;;  %p564_p6 = scmp.lt.u32.totalorder %s557_s6, %s1071_s1 }
  0x24   : > { %p560_p4 = pnand %p559_p2, %p558_p0 }
  0x26   : > { %p561_p5 = pneg %p560_p4 }
  0x28   : > { %p566_p8 = pnand %p564_p6, %p561_p5 }
  0x2a   : > { %569 = shalt.err (!%p566_p8)
}
  0x2b   : > { %s570_s21 = scalar_lea.vmem %s125_s29, 64  ;;  %p578_p7 = scmp.lt.s32.totalorder %s125_s29, %s125_s29 }
  0x2c   : > { %p571_p10 = scmp.ne.s32.totalorder %s125_s29, %s570_s21  ;;  %p579_p1 = scmp.lt.s32.totalorder %s570_s21, %s570_s21 }
  0x2e   : > { %p573_p12 = pnand %p571_p10, %p559_p2  ;;  %p580_p3 = por %p579_p1, %p578_p7 }
  0x30   : > { %p574_p9 = pneg %p573_p12 }
  0x32   : > { %p581_p11 = pnand %p580_p3, %p574_p9 }
  0x34   : > { %584 = shalt.err (!%p581_p11)
}
  0x35   : > { %444 = dma.hbm_to_vmem [thread:$0]  (!%p855_p13), %s1071_s1, 64, %s125_s29, [#allocation8]  }
  0x36   : > { %p29_p0 = scmp.ge.s32.totalorder %s28_s3, 2  ;;  %s31_s5 = sadd.s32 1, %s737_s18 }
  0x37   : > { %s38_s6 = sadd.s32 1, %s721_s14  ;;  %p45_p1 = scmp.ne.s32.totalorder %s721_s14, %s717_s13 }
  0x38   : > { %s1094_s3 = smov (%p29_p0, %s28_s3), 0  ;;  %s1096_s5 = smov (!%p29_p0, %s31_s5), %s737_s18 }
  0x39   : > { %1072 = sst [smem:[#allocation15_spill]] %s1094_s3  ;;  %p46_p3 = scmp.eq.s32.totalorder %s741_s19, 0 }
  0x3a   : > { %s83_s30 = ssub.s32 %s733_s17, %s1094_s3  ;;  %p33_p7 = scmp.ge.s32.totalorder %s1096_s5, 2 }
  0x3b   : > { %p454_p9 = scmp.lt.s32.totalorder %s741_s19, 4  ;;  %p887_p11 = por %p46_p3, %p45_p1 }
  0x3c   : > { %s135_s29 = sand.u32 1, %s721_s14   ;;  %s1098_s5 = smov (%p33_p7, %s1096_s5), 0 }
  0x3d   : > { %1074 = sst [smem:[#allocation16_spill]] %s1098_s5  ;;  %s417_s8 = sshll.u32 %s135_s29, 3 }
  0x3e   : > { %s35_s12 = ssub.s32 %s737_s18, %s1098_s5  ;;  %s432_s21 = sshll.u32 %s737_s18, 7 }
  0x3f   : > { %p36_p13 = scmp.eq.s32.totalorder %s35_s12, 0  ;;  %s84_s20 = sor.u32 %s83_s30, %s35_s12 }
  0x40   : > { %p85_p2 = scmp.eq.s32.totalorder %s84_s20, 0  ;;  %s908_s17 = scalar_lea.hbm %s1050_s0, %s432_s21 }
  0x41   : > { %s898_s28 = scalar_select %p36_p13, %s721_s14, %s38_s6  }
  0x42   : > { %s903_s4 = scalar_select %p85_p2, %s709_s11, %s87_s23  }
  0x43   : > { %s139_s26 = scalar_lea.vmem [#allocation4], %s417_s8  ;;  %p916_p4 = pnand %p454_p9, %p887_p11 }
  0x44   : > { %s147_s5 = sshll.u32 %s139_s26, 4  ;;  %s136_s23 = scalar_lea.sflag [#allocation5], %s135_s29  ;;  %s910_s5 = int_to_ptr.vmem [resolvable:$true] %s147_s5 }
  0x45   : > { %s585_s1 = scalar_lea.hbm %s908_s17, 128  ;;  %p587_p6 = pneg %p916_p4 }
  0x46   : > { %p586_p5 = scmp.ne.s32.totalorder %s908_s17, %s585_s1  ;;  %s590_s30 = scalar_lea.hbm %s1050_s0, 256 }
  0x47   : > { %p591_p12 = scmp.lt.u32.totalorder %s908_s17, %s1050_s0  ;;  %p592_p0 = scmp.lt.u32.totalorder %s590_s30, %s585_s1 }
  0x48   : > { %p588_p8 = pnand %p587_p6, %p586_p5  ;;  %p594_p3 = scmp.lt.u32.totalorder %s585_s1, %s908_s17 }
  0x49   : > { %p593_p1 = por %p592_p0, %p591_p12 }
  0x4a   : > { %p589_p10 = pneg %p588_p8 }
  0x4b   : > { %p595_p7 = por %p594_p3, %p593_p1 }
  0x4d   : > { %p596_p9 = pnand %p595_p7, %p589_p10 }
  0x4f   : > { %599 = shalt.err (!%p596_p9)
}
  0x50   : > { %s600_s29 = scalar_lea.vmem %s910_s5, 128  ;;  %s744_s12 = smov [#allocation4]  }
  0x51   : > { %p601_p11 = scmp.ne.s32.totalorder %s910_s5, %s600_s29  ;;  %s605_s20 = sshll.u32 %s744_s12, 4  ;;  %s606_s20 = int_to_ptr.vmem [resolvable:$false] %s605_s20 }
  0x52   : > { %s607_s21 = scalar_lea.vmem %s606_s20, 256  ;;  %p608_p5 = scmp.lt.s32.totalorder %s910_s5, %s606_s20 }
  0x53   : > { %p603_p13 = pnand %p601_p11, %p587_p6  ;;  %p609_p8 = scmp.lt.s32.totalorder %s607_s21, %s600_s29 }
  0x55   : > { %p604_p2 = pneg %p603_p13  ;;  %p610_p12 = por %p609_p8, %p608_p5 }
  0x57   : > { %p611_p0 = pnand %p610_p12, %p604_p2 }
  0x59   : > { %614 = shalt.err (!%p611_p0)
}
  0x5a   : > { %448 = dma.hbm_to_vmem [thread:$0]  (!%p916_p4), %s908_s17, 128, %s910_s5, %s136_s23  }
  0x5b   : > { %p1076_p10 = scmp.ne.s32.totalorder %s1069_s27, 0 }
  0x5c   : > { %s158_s1 = sand.u32 (!%p1076_p10), 1, %s717_s13   ;;  %p1077_p6 = scmp.ne.s32.totalorder (!%p1076_p10), %s1065_s24, 0 }
  0x5d   : > { %156 = sbr.rel (%p1076_p10) target bundleno = 941 (0x3ad), region = 28  ;;  %s948_s26 = sshll.u32 (!%p1076_p10), %s158_s1, 3 }
  0x5e   : > { %s159_s3 = scalar_lea.sflag (!%p1076_p10), [#allocation5], %s158_s1  ;;  %s162_s30 = scalar_lea.vmem (!%p1076_p10), [#allocation4], %s948_s26 }
  0x64   : > { %688 = dma.done.wait (%p1077_p6), %s159_s3, 128  }
  0x65   : > { %690 = vsyncadd (%p1077_p6), %s159_s3, 4294967168  ;;  %p1078_p1 = scmp.ne.s32.totalorder %s1064_s22, 0 }
  0x67   : > { %692 = dma.done.wait (%p1078_p1), [#allocation8], 64  }
  0x68   : > { %694 = vsyncadd (%p1078_p1), [#allocation8], 4294967232  ;;  %s184_s17 = sand.u32 1, %s705_s10   ;;  %p424_p4 = scmp.ne.s32.totalorder %s725_s15, 0 }
  0x69   : > { %s962_s27 = sshll.u32 %s184_s17, 2  ;;  %v191_v0 = vld [vmem:[%s162_s30] sm:$0xff] (!%p424_p4)  ;;  %vm195_vm0 = vcmask (!%p424_p4), 1043456   ;;  %v745_v5 = vmov (!%p424_p4), 839922192   ;;  %v207_v7 = vlaneseq (!%p424_p4)  ;;  %s746_s22 = smov (!%p424_p4), 127  }
  0x6a   : > { %s186_s5 = scalar_lea.vmem [#allocation9], %s962_s27  ;;  %190 = sbr.rel (%p424_p4) target bundleno = 790 (0x316), region = 40  ;;  %v193_v1 = vcombine.high (!%p424_p4), %v191_v0, %v191_v0  ;;  %v196_v2 = vsel (!%p424_p4), %vm195_vm0, %v191_v0, 0.0  ;;  %v205_v6 = vunpack.c.l.s4 (!%p424_p4), %v745_v5  ;;  %v223_v42 = vld [vmem:[#allocation7] sm:$0xf] (!%p424_p4)  ;;  %vm273_vm1 = vcmask (!%p424_p4), 3072  }
  0x6b   : > { %v208_v9 = vshrl.u32 (!%p424_p4), %v207_v7, 7  ;;  %s747_s24 = smov (!%p424_p4), 2   ;;  %s748_s6 = smov (!%p424_p4), 126  }
  0x6c   : > { %v197_v3 = vsel (!%p424_p4), %vm195_vm0, %v193_v1, 0.0  ;;  %v206_v8 = vunpack.c.0.s8 (!%p424_p4), %v205_v6 }
  0x6d   : > { %v198_v4 = vadd.f32 (!%p424_p4), %v197_v3, %v196_v2 }
  0x6e   : > { %v209_v10 = vsub.s32 (!%p424_p4), %v206_v8, %v208_v9 }
  0x6f   : > { %199 = vadd.xlane.f32.xlu0 (!%p424_p4), %v198_v4 }
  0xfc   : > { %v200_v11 = vpop.xlane.xlu0 %199 }
  0xfd   : > { %v202_v12 = vmul.f32 0.00390625, %v200_v11 }
  0xff   : > { %v210_v13 = vrot.slane %v202_v12, %v209_v10  ;;  %v226_v20 = vsel %vm195_vm0, %v202_v12, 0.0  ;;  %v259_v50 = vmul.f32 %v223_v42, %v202_v12 }
 0x100   : > { %v227_v21 = vrot.slane %v226_v20, 4 }
 0x101   : > { %v212_v14 = vsub.f32 %v191_v0, %v210_v13 }
 0x102   : > { %v228_v22 = vadd.f32 %v227_v21, %v226_v20 }
 0x103   : > { %v213_v15 = vmul.f32 %v212_v14, %v212_v14 }
 0x104   : > { %v229_v23 = vrot.slane %v228_v22, 2 }
 0x105   : > { %v215_v16 = vcombine.high %v213_v15, %v213_v15  ;;  %v217_v17 = vsel %vm195_vm0, %v213_v15, 0.0 }
 0x106   : > { %v230_v24 = vadd.f32 %v229_v23, %v228_v22 }
 0x107   : > { %v218_v18 = vsel %vm195_vm0, %v215_v16, 0.0 }
 0x108   : > { %v219_v19 = vadd.f32 %v218_v18, %v217_v17  ;;  %v231_v25 = vrot.slane %v230_v24, 1 }
 0x10a   : > { %220 = vadd.xlane.f32.xlu0 %v219_v19  ;;  %v232_v26 = vadd.f32 %v231_v25, %v230_v24 }
 0x10c   : > { %v234_v27 = vmul.f32 0.25, %v232_v26 }
 0x10e   : > { %v235_v28 = vsub.f32 %v202_v12, %v234_v27  ;;  %v261_v43 = vmul.f32 %v234_v27, %v223_v42 }
 0x110   : > { %v236_v29 = vmul.f32 256.0, %v235_v28 }
 0x112   : > { %v237_v30 = vmul.f32 %v236_v29, %v235_v28 }
 0x197   : > { %v221_v31 = vpop.xlane.xlu0 %220 }
 0x198   : > { %v238_v32 = vadd.f32 %v237_v30, %v221_v31  ;;  %v225_v47 = vmul.f32 0.003921569, %v221_v31 }
 0x19a   : > { %v239_v33 = vsel %vm195_vm0, %v238_v32, 0.0  ;;  %v248_v48 = vadd.f32 1e-05, %v225_v47 }
 0x19b   : > { %v240_v34 = vrot.slane %v239_v33, 4 }
 0x19d   : > { %v241_v35 = vadd.f32 %v240_v34, %v239_v33 }
 0x19f   : > { %v242_v36 = vrot.slane %v241_v35, 2 }
 0x1a1   : > { %v243_v37 = vadd.f32 %v242_v36, %v241_v35 }
 0x1a3   : > { %v244_v38 = vrot.slane %v243_v37, 1 }
 0x1a5   : > { %v245_v39 = vadd.f32 %v244_v38, %v243_v37 }
 0x1a7   : > { %v247_v40 = vmul.f32 0.0009775171, %v245_v39 }
 0x1a9   : > { %v250_v41 = vadd.f32 1e-05, %v247_v40 }
 0x1ab   : > { %552 = vrsqrt.f32 %v250_v41 }
 0x1ac   : > { %554 = vrsqrt.f32 %v248_v48 }
 0x1b5   : > { %v553_v44 = vpop.eup %552 }
 0x1b6   : > { %v262_v45 = vmul.f32 %v553_v44, %v261_v43  ;;  %v253_v46 = vmul.f32 %v553_v44, %v223_v42  ;;  %v555_v49 = vpop.eup %554 }
 0x1b7   : > { %v260_v51 = vmul.f32 %v555_v49, %v259_v50  ;;  %v252_v52 = vmul.f32 %v555_v49, %v223_v42 }
 0x1b8   : > { %264 = vrot.lane.b32.xlu1 %v262_v45, %s746_s22  ;;  %255 = vrot.lane.b32.xlu0 %v253_v46, %s746_s22 }
 0x22a   : > { %v265_v53 = vpop.permute.xlu1 %264  ;;  %v256_v54 = vpop.permute.xlu0 %255 }
 0x22b   : > { %v267_v55 = vadd.f32 %v265_v53, %v260_v51  ;;  %v258_v56 = vadd.f32 %v256_v54, %v252_v52 }
 0x22d   : > { %269 = vrot.lane.b32.xlu1 %v267_v55, %s747_s24  ;;  %274 = vst.msk [vmem:[#allocation2] sm:$0xf] %vm273_vm1, %v258_v56 }
 0x29f   : > { %v270_v57 = vpop.permute.xlu1 %269 }
 0x2a0   : > { %v272_v58 = vsub.f32 %v223_v42, %v270_v57 }
 0x2a2   : > { %276 = vrot.lane.b32.xlu1 %v272_v58, %s748_s6 }
 0x314   : > { %v277_v59 = vpop.permute.xlu1 %276 }
 0x315   : > { %279 = vst.msk [vmem:[#allocation3] sm:$0xf] %vm273_vm1, %v277_v59 }
 0x316 PF: > { %v280_v60 = vld [vmem:[#allocation2] sm:$0xf]  ;;  %v749_v61 = vmov 0   ;;  %s425_s23 = sshll.u32 %s725_s15, 7  ;;  %s428_s29 = sshll.u32 %s729_s16, 1 }
 0x317   : > { %556 = vset.pattern.permute.xlu0 %v749_v61  ;;  %s283_s7 = sshra.s32 %s425_s23, 7  ;;  %s313_s20 = sadd.s32 %s725_s15, %s428_s29 }
 0x318   : > { %290 = vperm.xlu0 %556, %v280_v60   ;;  %s426_s8 = sshll.u32 %s283_s7, 2  ;;  %s429_s21 = sshll.u32 %s313_s20, 6 }
 0x319   : > { %s286_s12 = scalar_lea.vmem %s162_s30, %s426_s8 [#allocation4]  ;;  %s317_s1 = sshll.u32 %s186_s5, 4  ;;  %s986_s1 = int_to_ptr.vmem [resolvable:$true] %s317_s1 }
 0x31a   : > { %v287_v63 = vld [vmem:[%s286_s12] sm:$0xf]  ;;  %s984_s24 = scalar_lea.hbm %s1052_s2, %s429_s21  ;;  %s302_s15 = scalar_lea.sflag [#allocation6], %s184_s17 }
 0x31b   : > { %s615_s16 = scalar_lea.vmem %s986_s1, 64  ;;  %p1079_p7 = scmp.ne.s32.totalorder %s1066_s25, 0 }
 0x31c   : > { %v281_v62 = vld [vmem:[#allocation3] sm:$0xf]  ;;  %p616_p3 = scmp.ne.s32.totalorder %s986_s1, %s615_s16  ;;  %s750_s26 = smov [#allocation9]  }
 0x31d   : > { %296 = vperm.xlu0 %556, %v281_v62   ;;  %s619_s30 = sshll.u32 %s750_s26, 4  ;;  %s620_s30 = int_to_ptr.vmem [resolvable:$false] %s619_s30 }
 0x31e   : > { %p617_p9 = pnand %p616_p3, %p1079_p7  ;;  %s621_s6 = scalar_lea.vmem %s620_s30, 128 }
 0x31f   : > { %p622_p13 = scmp.lt.s32.totalorder %s986_s1, %s620_s30  ;;  %p623_p2 = scmp.lt.s32.totalorder %s621_s6, %s615_s16 }
 0x320   : > { %p618_p11 = pneg %p617_p9 }
 0x321   : > { %p624_p5 = por %p623_p2, %p622_p13 }
 0x323   : > { %p625_p8 = pnand %p624_p5, %p618_p11 }
 0x397   : > { %v291_v0 = vpop.permute.xlu0 %290 }
 0x398   : > { %v293_v1 = vmul.f32 %v291_v0, %v287_v63 }
 0x39c   : > { %v297_v2 = vpop.permute.xlu0 %296 }
 0x39d   : > { %v299_v3 = vadd.f32 %v297_v2, %v293_v1 }
 0x39f   : > { %300 = vst [vmem:[%s186_s5] sm:$0xf] %v299_v3 }
 0x3a0   : > { %628 = shalt.err (!%p625_p8)
}
 0x3a1   : > { %s629_s17 = scalar_lea.hbm %s984_s24, 64  ;;  %s633_s23 = scalar_lea.hbm %s1052_s2, 256 }
 0x3a2   : > { %p630_p12 = scmp.ne.s32.totalorder %s984_s24, %s629_s17  ;;  %p634_p6 = scmp.lt.u32.totalorder %s984_s24, %s1052_s2 }
 0x3a3   : > { %p635_p1 = scmp.lt.u32.totalorder %s633_s23, %s629_s17  ;;  %p637_p3 = scmp.lt.u32.totalorder %s629_s17, %s984_s24 }
 0x3a4   : > { %p631_p0 = pnand %p630_p12, %p1079_p7 }
 0x3a5   : > { %p636_p4 = por %p635_p1, %p634_p6 }
 0x3a6   : > { %p632_p10 = pneg %p631_p0 }
 0x3a7   : > { %p638_p9 = por %p637_p3, %p636_p4 }
 0x3a9   : > { %p639_p11 = pnand %p638_p9, %p632_p10 }
 0x3ab   : > { %642 = shalt.err (!%p639_p11)
}
 0x3ac   : > { %439 = dma.vmem_to_hbm [thread:$0]  (%p1079_p7), %s986_s1, 64, %s984_s24, %s302_s15  }
 0x3ad PF: > { %s1080_s29 = sld [smem:[#allocation14_spill]]  ;;  %p456_p13 = scmp.ge.s32.totalorder %s741_s19, 2 }
 0x3ae   : > { %s329_s12 = sand.u32 1, %s701_s9  }
 0x3af   : > { %s330_s20 = scalar_lea.sflag [#allocation6], %s329_s12 }
 0x3b3   : > { %p1081_p2 = scmp.ne.s32.totalorder %s1080_s29, 0 }
 0x3b5   : > { %p450_p5 = pnand %p456_p13, %p1081_p2 }
 0x3b7   : > { %696 = dma.done.wait (!%p450_p5), %s330_s20, 64  }
 0x3b8   : > { %698 = vsyncadd (!%p450_p5), %s330_s20, 4294967232  ;;  %s19_s19 = sadd.s32 1, %s741_s19   ;;  %s1082_s15 = sld [smem:[#allocation13_spill]] }
 0x3b9   : > { %p16_p8 = scmp.ge.s32.totalorder %s19_s19, 6   ;;  %s1083_s17 = sld [smem:[#allocation15_spill]] }
 0x3ba   : > { %s1084_s25 = sld [smem:[#allocation16_spill]]  ;;  %s1085_s9 = smov %s705_s10 }
 0x3bb   : > { %s1086_s10 = smov %s709_s11  ;;  %s1087_s11 = smov %s903_s4 }
 0x3bc   : > { %s1088_s12 = smov %s717_s13  ;;  %s1089_s13 = smov %s721_s14 }
 0x3bd   : > { %s1090_s14 = smov %s898_s28  ;;  %s1091_s16 = smov %s737_s18 }
 0x3be   :  { %18 = sbr.rel (!%p16_p8) target bundleno = 12 (0xc), region = 82 }
 0x3c0   : > { %s1092_s18 = smov %s1084_s25 }
 0x3c5   :  { %335 = vsyncpa [#allocation5], 1 }
 0x3c6   :  { %337 = vsyncpa [#allocation5 + $0x1], 1 }
 0x3c7   :  { %338 = vsyncpa [#allocation8], 1 }
 0x3c8   :  { %339 = vsyncpa [#allocation6], 1 }
 0x3c9   :  { %341 = vsyncpa [#allocation6 + $0x1], 1 }

</bundles_post_ra>
